<compile_context>
chip_gen: v7x
topology: tpu7x:2x2x1
jax: 0.10.0
libtpu: 0.0.40
codegen_flags: <defaults>
</compile_context>

<pallas_src>
import jax
import jax.numpy as jnp
from jax import lax
from jax.experimental import pallas as pl
from jax.experimental.pallas import tpu as pltpu

_LANES = 128  # one f32 vreg is (8 sublanes, 128 lanes)


def _iou_loss_kernel(boxes_ref, out_ref):
    # boxes_ref: (8, 128) f32 in VMEM.
    #   rows 0..3 = result_bb [x, y, w, h], rows 4..7 = gt [x, y, w, h];
    #   real data lives in lane 0 only, all other lanes are zero.
    # out_ref: (1, 1) f32 in SMEM (the scalar loss).
    bx = boxes_ref[0:1, :]
    by = boxes_ref[1:2, :]
    bw = boxes_ref[2:3, :]
    bh = boxes_ref[3:4, :]
    gx = boxes_ref[4:5, :]
    gy = boxes_ref[5:6, :]
    gw = boxes_ref[6:7, :]
    gh = boxes_ref[7:8, :]

    left = jnp.maximum(bx, gx)
    right = jnp.minimum(bx + bw, gx + gw)
    top = jnp.maximum(by, gy)
    bottom = jnp.minimum(by + bh, gy + gh)

    intersect = jnp.maximum(0.0, right - left) * jnp.maximum(0.0, bottom - top)
    union = bw * bh + gw * gh - intersect
    # EUP reciprocal instead of the multi-op VALU f32 divide sequence.
    iou = jnp.clip(intersect * pl.reciprocal(union, approx=False), 0.0, 1.0)
    loss = (1.0 - iou) * 10.0  # (1, 128)

    # Extract lane 0 (the only pair the module returns) as a scalar.
    # Dead lanes hold 0/0 = NaN, so mask them before the cross-lane reduce.
    lane = lax.broadcasted_iota(jnp.int32, loss.shape, 1)
    out_ref[0, 0] = jnp.sum(jnp.where(lane == 0, loss, 0.0))


# Gridless single-step call: whole (8, 128) tile in VMEM, scalar out in SMEM.
_iou_loss_call = pl.pallas_call(
    _iou_loss_kernel,
    out_shape=jax.ShapeDtypeStruct((1, 1), jnp.float32),
    in_specs=[pl.BlockSpec(memory_space=pltpu.MemorySpace.VMEM)],
    out_specs=pl.BlockSpec(memory_space=pltpu.MemorySpace.SMEM),
)


def iou_loss(result_bb, gt):
    """JAX/Pallas equivalent of IouLoss.forward(result_bb, gt).

    result_bb, gt: (N, 4) or (4,) arrays of [x, y, w, h] boxes.
    Returns a scalar float32 = (1 - IoU(result_bb[0], gt[0])) * 10.
    """
    bb = jnp.asarray(result_bb, jnp.float32).reshape(-1, 4)
    g = jnp.asarray(gt, jnp.float32).reshape(-1, 4)
    # Only pair 0 is consumed by the module -> pack just those 8 scalars into
    # lane 0 of a single (8, 128) vreg-aligned tile; everything else stays 0.
    pair0 = jnp.concatenate([bb[0], g[0]])  # (8,)
    boxes = jnp.zeros((8, _LANES), jnp.float32).at[:, 0].set(pair0)
    # TODO(synk): if many losses per step are needed, batch pairs along the
    # lane axis and return a (B,) vector instead of re-calling per pair.
    return _iou_loss_call(boxes)[0, 0]


if __name__ == "__main__":
    key = jax.random.PRNGKey(0)
    k1, k2, k3, k4 = jax.random.split(key, 4)

    N = 8  # small number of box pairs, module only uses pair 0
    xy_bb = jax.random.uniform(k1, (N, 2), jnp.float32, 0.0, 50.0)
    wh_bb = jax.random.uniform(k2, (N, 2), jnp.float32, 10.0, 40.0)
    xy_gt = jax.random.uniform(k3, (N, 2), jnp.float32, 0.0, 50.0)
    wh_gt = jax.random.uniform(k4, (N, 2), jnp.float32, 10.0, 40.0)
    result_bb = jnp.concatenate([xy_bb, wh_bb], axis=1)
    gt = jnp.concatenate([xy_gt, wh_gt], axis=1)

    out = iou_loss(result_bb, gt)
    jax.block_until_ready(out)

    # Pure-JAX reference of the same formula (first pair only).
    b0, g0 = result_bb[0], gt[0]
    left = jnp.maximum(b0[0], g0[0])
    right = jnp.minimum(b0[0] + b0[2], g0[0] + g0[2])
    top = jnp.maximum(b0[1], g0[1])
    bottom = jnp.minimum(b0[1] + b0[3], g0[1] + g0[3])
    inter = jnp.maximum(0.0, right - left) * jnp.maximum(0.0, bottom - top)
    union = b0[2] * b0[3] + g0[2] * g0[3] - inter
    ref = (1.0 - jnp.clip(inter / union, 0.0, 1.0)) * 10.0
    assert jnp.allclose(out, ref, rtol=1e-5, atol=1e-5), (out, ref)

    print("KERNEL_OK")
</pallas_src>

<mosaic_0001>
module attributes {stable_mosaic.version = 11 : i64} {
  func.func @_iou_loss_kernel(%arg0: memref<8x128xf32, #tpu.memory_space<vmem>>, %arg1: memref<1x1xf32, #tpu.memory_space<smem>>) attributes {dimension_semantics = [], scalar_prefetch = 0 : i64, scratch_operands = 0 : i64, tpu.core_type = #tpu.core_type<tc>} {
    %c0 = arith.constant 0 : index
    %c0_0 = arith.constant 0 : index
    %0 = vector.load %arg0[%c0, %c0_0] : memref<8x128xf32, #tpu.memory_space<vmem>>, vector<1x128xf32>
    %c1 = arith.constant 1 : index
    %c0_1 = arith.constant 0 : index
    %1 = vector.load %arg0[%c1, %c0_1] : memref<8x128xf32, #tpu.memory_space<vmem>>, vector<1x128xf32>
    %c2 = arith.constant 2 : index
    %c0_2 = arith.constant 0 : index
    %2 = vector.load %arg0[%c2, %c0_2] : memref<8x128xf32, #tpu.memory_space<vmem>>, vector<1x128xf32>
    %c3 = arith.constant 3 : index
    %c0_3 = arith.constant 0 : index
    %3 = vector.load %arg0[%c3, %c0_3] : memref<8x128xf32, #tpu.memory_space<vmem>>, vector<1x128xf32>
    %c4 = arith.constant 4 : index
    %c0_4 = arith.constant 0 : index
    %4 = vector.load %arg0[%c4, %c0_4] : memref<8x128xf32, #tpu.memory_space<vmem>>, vector<1x128xf32>
    %c5 = arith.constant 5 : index
    %c0_5 = arith.constant 0 : index
    %5 = vector.load %arg0[%c5, %c0_5] : memref<8x128xf32, #tpu.memory_space<vmem>>, vector<1x128xf32>
    %c6 = arith.constant 6 : index
    %c0_6 = arith.constant 0 : index
    %6 = vector.load %arg0[%c6, %c0_6] : memref<8x128xf32, #tpu.memory_space<vmem>>, vector<1x128xf32>
    %c7 = arith.constant 7 : index
    %c0_7 = arith.constant 0 : index
    %7 = vector.load %arg0[%c7, %c0_7] : memref<8x128xf32, #tpu.memory_space<vmem>>, vector<1x128xf32>
    %8 = arith.maximumf %0, %4 : vector<1x128xf32>
    %9 = arith.addf %0, %2 : vector<1x128xf32>
    %10 = arith.addf %4, %6 : vector<1x128xf32>
    %11 = arith.minimumf %9, %10 : vector<1x128xf32>
    %12 = arith.maximumf %1, %5 : vector<1x128xf32>
    %13 = arith.addf %1, %3 : vector<1x128xf32>
    %14 = arith.addf %5, %7 : vector<1x128xf32>
    %15 = arith.minimumf %13, %14 : vector<1x128xf32>
    %16 = arith.subf %11, %8 : vector<1x128xf32>
    %cst = arith.constant 0.000000e+00 : f32
    %17 = vector.broadcast %cst : f32 to vector<1x128xf32>
    %18 = arith.maximumf %17, %16 : vector<1x128xf32>
    %19 = arith.subf %15, %12 : vector<1x128xf32>
    %cst_8 = arith.constant 0.000000e+00 : f32
    %20 = vector.broadcast %cst_8 : f32 to vector<1x128xf32>
    %21 = arith.maximumf %20, %19 : vector<1x128xf32>
    %22 = arith.mulf %18, %21 : vector<1x128xf32>
    %23 = arith.mulf %2, %3 : vector<1x128xf32>
    %24 = arith.mulf %6, %7 : vector<1x128xf32>
    %25 = arith.addf %23, %24 : vector<1x128xf32>
    %26 = arith.subf %25, %22 : vector<1x128xf32>
    %27 = tpu.reciprocal %26 : vector<1x128xf32> -> vector<1x128xf32>
    %28 = arith.mulf %22, %27 : vector<1x128xf32>
    %cst_9 = arith.constant 0.000000e+00 : f32
    %cst_10 = arith.constant 1.000000e+00 : f32
    %29 = vector.broadcast %cst_9 : f32 to vector<1x128xf32>
    %30 = arith.maximumf %29, %28 : vector<1x128xf32>
    %31 = vector.broadcast %cst_10 : f32 to vector<1x128xf32>
    %32 = arith.minimumf %31, %30 : vector<1x128xf32>
    %cst_11 = arith.constant 1.000000e+00 : f32
    %33 = vector.broadcast %cst_11 : f32 to vector<1x128xf32>
    %34 = arith.subf %33, %32 : vector<1x128xf32>
    %cst_12 = arith.constant 1.000000e+01 : f32
    %35 = vector.broadcast %cst_12 : f32 to vector<1x128xf32>
    %36 = arith.mulf %34, %35 : vector<1x128xf32>
    %37 = tpu.iota {dimensions = array<i32: 1>} : vector<1x128xi32>
    %c0_i32 = arith.constant 0 : i32
    %38 = vector.broadcast %c0_i32 : i32 to vector<1x128xi32>
    %39 = arith.cmpi eq, %37, %38 : vector<1x128xi32>
    %cst_13 = arith.constant 0.000000e+00 : f32
    %40 = vector.broadcast %cst_13 : f32 to vector<1x128xf32>
    %41 = arith.select %39, %36, %40 : vector<1x128xi1>, vector<1x128xf32>
    %42 = vector.shape_cast %41 : vector<1x128xf32> to vector<1x1x128xf32>
    %cst_14 = arith.constant dense<0.000000e+00> : vector<1xf32>
    %43 = vector.multi_reduction <add>, %42, %cst_14 [1, 2] : vector<1x1x128xf32> to vector<1xf32>
    %44 = vector.shape_cast %43 : vector<1xf32> to vector<1x1x1xf32>
    %45 = vector.extract %44[0, 0, 0] : f32 from vector<1x1x1xf32>
    %c0_15 = arith.constant 0 : index
    %c0_16 = arith.constant 0 : index
    %46 = memref.load %arg1[%c0_15, %c0_16] : memref<1x1xf32, #tpu.memory_space<smem>>
    memref.store %45, %arg1[%c0_15, %c0_16] : memref<1x1xf32, #tpu.memory_space<smem>>
    return
  }
}

</mosaic_0001>

<bundles_post_ra>
// kernel: tpu_custom_call.1
= control target key start
LH: loop header
LB: loop body
LE: loop exit
PB: predicated region body
PF: predicated region fallthrough
CT: control target
= control target key end

     0   :  { %6 = vsyncpa [#allocation3], 0  ;;  %s161_s0 = inlined_call_operand.hbm [shape: f32[8,128], index: 0, kind: input, shape index: {}]   ;;  %s162_s1 = inlined_call_operand.hbm [shape: f32[1,1], index: 1, kind: output, shape index: {}]  }
   0x1   :  { %7 = vsyncpa [#allocation4], 0  ;;  %s125_s6 = smov [#allocation2]   ;;  %s89_s10 = scalar_lea.hbm %s161_s0, 128 }
   0x2   :  { %s14_s7 = sshll.u32 %s125_s6, 4  ;;  %p90_p0 = scmp.ne.s32.totalorder %s161_s0, %s89_s10  ;;  %s15_s7 = int_to_ptr.vmem [resolvable:$true] %s14_s7 }
   0x3   :  { %p93_p1 = scmp.lt.u32.totalorder %s89_s10, %s161_s0 }
   0x5   :  { %p95_p2 = pnand %p93_p1, %p90_p0 }
   0x7   :  { %98 = shalt.err (!%p95_p2)
}
   0x8   :  { %s99_s15 = scalar_lea.vmem %s15_s7, 128  ;;  %p104_p4 = scmp.lt.s32.totalorder %s15_s7, %s15_s7 }
   0x9   :  { %p100_p3 = scmp.ne.s32.totalorder %s15_s7, %s99_s15  ;;  %p105_p5 = scmp.lt.s32.totalorder %s99_s15, %s99_s15 }
   0xb   :  { %p106_p6 = por %p105_p5, %p104_p4 }
   0xd   :  { %p107_p7 = pnand %p106_p6, %p100_p3 }
   0xf   :  { %110 = shalt.err (!%p107_p7)
}
  0x10   :  { %17 = dma.hbm_to_vmem [thread:$0]  %s161_s0, 128, %s15_s7, [#allocation3]  }
  0x11   :  { %121 = dma.done.wait [#allocation3], 128  }
  0x12   :  { %122 = vsyncadd [#allocation3], 4294967168  ;;  %v21_v0 = vld [vmem:[#allocation2] sm:$0x1]  ;;  %v22_v1 = vld [vmem:[#allocation2 + $0x1] sm:$0x1]  ;;  %v52_v26 = vlaneseq }
  0x13   :  { %v23_v2 = vld [vmem:[#allocation2 + $0x2] sm:$0x1]  ;;  %v24_v3 = vld [vmem:[#allocation2 + $0x3] sm:$0x1]  ;;  %v25_v4 = vld [vmem:[#allocation2 + $0x4] sm:$0x1] }
  0x14   :  { %v26_v5 = vld [vmem:[#allocation2 + $0x5] sm:$0x1]  ;;  %v30_v6 = vadd.f32 %v23_v2, %v21_v0  ;;  %v27_v7 = vld [vmem:[#allocation2 + $0x6] sm:$0x1]  ;;  %v28_v8 = vld [vmem:[#allocation2 + $0x7] sm:$0x1]  ;;  %v34_v9 = vadd.f32 %v24_v3, %v22_v1  ;;  %v29_v10 = vmax.f32 %v21_v0, %v25_v4  ;;  %v42_v16 = vmul.f32 %v24_v3, %v23_v2 }
  0x15   :  { %v31_v11 = vadd.f32 %v27_v7, %v25_v4  ;;  %v33_v12 = vmax.f32 %v22_v1, %v26_v5  ;;  %v35_v13 = vadd.f32 %v28_v8, %v26_v5  ;;  %v43_v17 = vmul.f32 %v28_v8, %v27_v7  ;;  %s111_s20 = scalar_lea.hbm %s162_s1, 16 }
  0x16   :  { %v53_v29 = vand.u32 127, %v52_v26  ;;  %vm56_vm1 = vcmask 1040384   ;;  %p112_p8 = scmp.ne.s32.totalorder %s162_s1, %s111_s20  ;;  %p115_p9 = scmp.lt.u32.totalorder %s111_s20, %s162_s1 }
  0x17   :  { %v32_v14 = vmin.f32 %v30_v6, %v31_v11  ;;  %v36_v15 = vmin.f32 %v34_v9, %v35_v13  ;;  %v44_v22 = vadd.f32 %v43_v17, %v42_v16 }
  0x18   :  { %vm54_vm0 = vcmp.eq.s32.totalorder %v53_v29, 0  ;;  %p117_p10 = pnand %p115_p9, %p112_p8 }
  0x19   :  { %v37_v18 = vsub.f32 %v32_v14, %v29_v10  ;;  %v39_v19 = vsub.f32 %v36_v15, %v33_v12 }
  0x1b   :  { %v38_v20 = vmax.f32 %v37_v18, 0.0  ;;  %v40_v21 = vmax.f32 %v39_v19, 0.0 }
  0x1d   :  { %v41_v23 = vmul.f32 %v40_v21, %v38_v20 }
  0x1f   :  { %v45_v24 = vsub.f32 %v44_v22, %v41_v23 }
  0x21   :  { %87 = vrcp.f32 %v45_v24 }
  0x2b   :  { %v88_v25 = vpop.eup %87 }
  0x2c   :  { %v47_v27 = vmul.f32 %v88_v25, %v41_v23 }
  0x2e   :  { %v48_v28 = vmax.f32 %v47_v27, 0.0 }
  0x30   :  { %v49_v30 = vmin.f32 %v48_v28, 1.0 }
  0x32   :  { %v50_v31 = vsub.f32 1.0, %v49_v30 }
  0x34   :  { %v51_v32 = vmul.f32 10.0, %v50_v31 }
  0x36   :  { %v55_v33 = vsel %vm54_vm0, %v51_v32, 0.0 }
  0x37   :  { %v57_v34 = vsel %vm56_vm1, %v55_v33, 0.0 }
  0x38   :  { %58 = vadd.xlane.f32.xlu0 %v57_v34 }
  0xc5   :  { %v59_v35 = vpop.xlane.xlu0 %58 }
  0xc6   :  { %v60_v36 = vrot.slane %v59_v35, 4 }
  0xc8   :  { %v61_v37 = vadd.f32 %v60_v36, %v59_v35 }
  0xca   :  { %v62_v38 = vrot.slane %v61_v37, 2 }
  0xcc   :  { %v63_v39 = vadd.f32 %v62_v38, %v61_v37 }
  0xce   :  { %v64_v40 = vrot.slane %v63_v39, 1 }
  0xd0   :  { %v65_v41 = vadd.f32 %v64_v40, %v63_v39 }
  0xd2   :  { %83 = vpush %v65_v41 }
 0x103   :  { %s84_s0 = spop %83 }
 0x104   :  { %68 = sst [smem:[#allocation5]] %s84_s0 }
 0x105   :  { %120 = shalt.err (!%p117_p10)
}
 0x106   :  { %s126_s25 = smov [#allocation5]  }
 0x107   :  { %76 = dma.smem_to_hbm %s126_s25, 16, %s162_s1, [#allocation4]  }
 0x108   :  { %123 = dma.done.wait [#allocation4], 16  }
 0x109   :  { %124 = vsyncadd [#allocation4], 4294967280 }
 0x10a   :  { %80 = sfence }
 0x10b   :  { %81 = vsyncpa [#allocation3], 1 }
 0x10c   :  { %82 = vsyncpa [#allocation4], 1 }

</bundles_post_ra>
